<compile_context>
chip_gen: v7x
topology: tpu7x:2x2x1
jax: 0.10.0
libtpu: 0.0.40
codegen_flags: <defaults>
</compile_context>

<pallas_src>
import jax
import jax.numpy as jnp
from jax.experimental import pallas as pl
from jax.experimental.pallas import tpu as pltpu


def _cube_kernel(x_ref, o_ref):
    x = x_ref[...]
    o_ref[...] = x * x * x  # x ** 3 on the VPU (2 vmuls per vreg; mem-bound anyway)


def _round_up(a: int, b: int) -> int:
    return -(-a // b) * b


def true_cube(x: jax.Array) -> jax.Array:
    """Elementwise x ** 3 via a Pallas TPU kernel. Works for any shape/dtype."""
    orig_shape = x.shape
    orig_dtype = x.dtype

    flat = x.reshape(-1)
    n = flat.shape[0]

    LANE = 128
    dtype_bytes = jnp.dtype(orig_dtype).itemsize
    # Native packed sublane tile: 8 rows for 32-bit, 16 for bf16, 32 for int8/fp8.
    sublane_mult = max(8, 32 // max(dtype_bytes, 1))

    # Pad only to the lane multiple (cheap; skipped entirely when already aligned).
    pad = (-n) % LANE
    if pad:
        flat = jnp.pad(flat, (0, pad))
    padded_n = n + pad

    # Widest lane-dense last dim that keeps `rows` a whole number of packed tiles.
    lanes = LANE
    for cand in (2048, 1024, 512, 256):
        if padded_n % (cand * sublane_mult) == 0:
            lanes = cand
            break
    rows = padded_n // lanes
    x2d = flat.reshape(rows, lanes)

    # ~2 MiB blocks: amortizes per-step overhead to near the HBM roofline while
    # 2x(in) + 2x(out) double-buffered blocks (~8 MiB) stay under the default
    # scoped VMEM limit on every generation (v5e 16 MiB, v6e/v7x 32 MiB).
    target_block_bytes = 2 << 20
    target_rows = max(
        sublane_mult,
        (target_block_bytes // (dtype_bytes * lanes)) // sublane_mult * sublane_mult,
    )
    if rows > 2 * sublane_mult:
        # Keep at least 2 grid steps so both v7x TensorCores get work.
        target_rows = min(target_rows, _round_up(-(-rows // 2), sublane_mult))

    if rows < sublane_mult:
        # Tiny input: single block equal to the full row extent.
        tile_rows = rows
    else:
        tile_rows = min(target_rows, _round_up(rows, sublane_mult))

    grid = (pl.cdiv(rows, tile_rows),)

    out2d = pl.pallas_call(
        _cube_kernel,
        out_shape=jax.ShapeDtypeStruct((rows, lanes), orig_dtype),
        grid_spec=pltpu.PrefetchScalarGridSpec(
            num_scalar_prefetch=0,
            grid=grid,
            in_specs=[pl.BlockSpec((tile_rows, lanes), lambda i: (i, 0))],
            out_specs=pl.BlockSpec((tile_rows, lanes), lambda i: (i, 0)),
        ),
        compiler_params=pltpu.CompilerParams(
            dimension_semantics=("parallel",),
        ),
    )(x2d)

    if pad:
        return out2d.reshape(-1)[:n].reshape(orig_shape)
    return out2d.reshape(orig_shape)


if __name__ == "__main__":
    key = jax.random.PRNGKey(0)
    # Small NCHW-style input, consistent with an elementwise forward pass.
    x = jax.random.normal(key, (2, 4, 16, 16), dtype=jnp.float32)

    y = true_cube(x)
    jax.block_until_ready(y)

    # Correctness check against plain JAX reference (x ** 3).
    ref = x ** 3
    assert y.shape == x.shape and y.dtype == x.dtype
    assert jnp.allclose(y, ref, atol=1e-6, rtol=1e-6)

    # Also check the original example value X = [3.0] -> [27.0].
    x_scalar = jnp.array([3.0], dtype=jnp.float32)
    y_scalar = true_cube(x_scalar)
    jax.block_until_ready(y_scalar)
    assert jnp.allclose(y_scalar, jnp.array([27.0], dtype=jnp.float32))

    print("KERNEL_OK")
</pallas_src>

<mosaic_0001>
module attributes {stable_mosaic.version = 11 : i64} {
  func.func @_cube_kernel(%arg0: i32, %arg1: memref<8x256xf32, #tpu.memory_space<vmem>>, %arg2: memref<8x256xf32, #tpu.memory_space<vmem>>) attributes {dimension_semantics = [#tpu.dimension_semantics<parallel>], iteration_bounds = array<i64: 1>, scalar_prefetch = 0 : i64, scratch_operands = 0 : i64, tpu.core_type = #tpu.core_type<tc>, window_params = [{transform_indices = @transform_0, window_bounds = array<i64: 8, 256>}, {transform_indices = @transform_1, window_bounds = array<i64: 8, 256>}]} {
    %c0 = arith.constant 0 : index
    %c0_0 = arith.constant 0 : index
    %0 = vector.load %arg1[%c0, %c0_0] : memref<8x256xf32, #tpu.memory_space<vmem>>, vector<8x256xf32>
    %1 = arith.mulf %0, %0 : vector<8x256xf32>
    %2 = arith.mulf %1, %0 : vector<8x256xf32>
    %c0_1 = arith.constant 0 : index
    %c0_2 = arith.constant 0 : index
    %3 = vector.load %arg2[%c0_1, %c0_2] : memref<8x256xf32, #tpu.memory_space<vmem>>, vector<8x256xf32>
    tpu.vector_store %arg2[%c0_1, %c0_2], %2 {strides = array<i32>} : memref<8x256xf32, #tpu.memory_space<vmem>>, vector<8x256xf32>,
    return
  }
  func.func @transform_0(%arg0: i32) -> (i32, i32) {
    %c0_i32 = arith.constant 0 : i32
    %c0_i32_0 = arith.constant 0 : i32
    return %arg0, %c0_i32 : i32, i32
  }
  func.func @transform_1(%arg0: i32) -> (i32, i32) {
    %c0_i32 = arith.constant 0 : i32
    %c0_i32_0 = arith.constant 0 : i32
    return %arg0, %c0_i32 : i32, i32
  }
}

</mosaic_0001>

<bundles_post_ra>
// kernel: tpu_custom_call.1
= control target key start
LH: loop header
LB: loop body
LE: loop exit
PB: predicated region body
PF: predicated region fallthrough
CT: control target
= control target key end

     0   :  { %6 = vsyncpa [#allocation3], 0  ;;  %s130_s0 = inlined_call_operand.hbm [shape: f32[8,256], index: 0, kind: input, shape index: {}]   ;;  %s131_s1 = inlined_call_operand.hbm [shape: f32[8,256], index: 1, kind: output, shape index: {}]  }
   0x1   :  { %7 = vsyncpa [#allocation4], 0  ;;  %s94_s6 = smov [#allocation2]   ;;  %s46_s10 = scalar_lea.hbm %s130_s0, 256 }
   0x2   :  { %s14_s7 = sshll.u32 %s94_s6, 4  ;;  %p47_p0 = scmp.ne.s32.totalorder %s130_s0, %s46_s10  ;;  %s15_s7 = int_to_ptr.vmem [resolvable:$true] %s14_s7 }
   0x3   :  { %p50_p1 = scmp.lt.u32.totalorder %s46_s10, %s130_s0 }
   0x5   :  { %p52_p2 = pnand %p50_p1, %p47_p0 }
   0x7   :  { %55 = shalt.err (!%p52_p2)
}
   0x8   :  { %s56_s15 = scalar_lea.vmem %s15_s7, 256  ;;  %p61_p4 = scmp.lt.s32.totalorder %s15_s7, %s15_s7 }
   0x9   :  { %p57_p3 = scmp.ne.s32.totalorder %s15_s7, %s56_s15  ;;  %p62_p5 = scmp.lt.s32.totalorder %s56_s15, %s56_s15 }
   0xb   :  { %p63_p6 = por %p62_p5, %p61_p4 }
   0xd   :  { %p64_p7 = pnand %p63_p6, %p57_p3 }
   0xf   :  { %67 = shalt.err (!%p64_p7)
}
  0x10   :  { %17 = dma.hbm_to_vmem [thread:$0]  %s130_s0, 256, %s15_s7, [#allocation3]  }
  0x11   :  { %90 = dma.done.wait [#allocation3], 256  }
  0x12   :  { %91 = vsyncadd [#allocation3], 4294967040  ;;  %v21_v0 = vld [vmem:[#allocation2] sm:$0xff]  ;;  %v22_v1 = vld [vmem:[#allocation2 + $0x8] sm:$0xff]  ;;  %s95_s18 = smov [#allocation5]  }
  0x13   :  { %s35_s19 = sshll.u32 %s95_s18, 4  ;;  %v23_v2 = vmul.f32 %v21_v0, %v21_v0  ;;  %v24_v3 = vmul.f32 %v22_v1, %v22_v1  ;;  %s36_s19 = int_to_ptr.vmem [resolvable:$true] %s35_s19 }
  0x14   :  { %s68_s20 = scalar_lea.vmem %s36_s19, 256  ;;  %p73_p9 = scmp.lt.s32.totalorder %s36_s19, %s36_s19 }
  0x15   :  { %v25_v4 = vmul.f32 %v23_v2, %v21_v0  ;;  %v26_v5 = vmul.f32 %v24_v3, %v22_v1  ;;  %p69_p8 = scmp.ne.s32.totalorder %s36_s19, %s68_s20  ;;  %p74_p10 = scmp.lt.s32.totalorder %s68_s20, %s68_s20 }
  0x17   :  { %27 = vst [vmem:[#allocation5] sm:$0xff] %v25_v4  ;;  %28 = vst [vmem:[#allocation5 + $0x8] sm:$0xff] %v26_v5  ;;  %p75_p11 = por %p74_p10, %p73_p9 }
  0x19   :  { %p76_p12 = pnand %p75_p11, %p69_p8 }
  0x1b   :  { %79 = shalt.err (!%p76_p12)
}
  0x1c   :  { %s80_s22 = scalar_lea.hbm %s131_s1, 256 }
  0x1d   :  { %p81_p13 = scmp.ne.s32.totalorder %s131_s1, %s80_s22  ;;  %p84_p0 = scmp.lt.u32.totalorder %s80_s22, %s131_s1 }
  0x1f   :  { %p86_p1 = pnand %p84_p0, %p81_p13 }
  0x21   :  { %89 = shalt.err (!%p86_p1)
}
  0x22   :  { %38 = dma.vmem_to_hbm [thread:$0]  %s36_s19, 256, %s131_s1, [#allocation4]  }
  0x23   :  { %92 = dma.done.wait [#allocation4], 256  }
  0x24   :  { %93 = vsyncadd [#allocation4], 4294967040 }
  0x25   :  { %42 = vsyncpa [#allocation3], 1 }
  0x26   :  { %43 = vsyncpa [#allocation4], 1 }

</bundles_post_ra>
